<compile_context>
chip_gen: v5e
topology: v5e:2x2
jax: 0.10.0
libtpu: 0.0.40
codegen_flags: <defaults>
</compile_context>

<pallas_src>
import numpy as np

import jax
import jax.numpy as jnp
from jax.experimental import pallas as pl
from jax.experimental.pallas import tpu as pltpu

ALGEBRA_DIM = 3
MV_DIM = 1 << ALGEBRA_DIM            # 8 multivector components == in_features
SUBSPACE_SIZES = (1, 3, 3, 1)        # grade sizes of Cl(3,0,0)
N_GRADES = len(SUBSPACE_SIZES)       # 4 == algebra.n_subspaces
EPS = 1e-6
MAX_SEQ = 3000                       # size of the `a` parameter in the module

PACK = 16                            # multivectors packed per 128-lane row
LANES = PACK * MV_DIM                # 128


# ----------------------------------------------------------------------------
# Pallas kernel: one (TR, 128) lane-dense tile (= TR*16 multivectors) per step
# ----------------------------------------------------------------------------
def norm_kernel(x_ref, sa_ref, o_ref):
    x = x_ref[...]            # (TR, 128): 16 multivectors per row, blades on lanes
    sa = sa_ref[...]          # (TR, 128): sigmoid(a) already expanded to blades

    # Lane position within each 8-blade group; grades are [0, 1,1,1, 2,2,2, 3].
    lane = jax.lax.broadcasted_iota(jnp.int32, (1, x.shape[-1]), 1) % MV_DIM
    m_mid = jnp.where((lane == 2) | (lane == 5), 1.0, 0.0)    # grade-1 / grade-2 centers
    m_edge = jnp.where((lane == 0) | (lane == 7), 1.0, 0.0)   # grade-0 / grade-3 blades

    y = x * x
    # 3-lane neighbourhood sum using BOTH one-lane rotations (direction-agnostic,
    # wraparound terms are masked out below); valid at the grade-center lanes 2/5.
    nbr = pltpu.roll(y, 1, axis=1) + y + pltpu.roll(y, 127, axis=1)
    ctr = nbr * m_mid                                          # grade sums at lanes 2/5
    # Spread each grade sum from its center lane to the whole grade (lanes 1-3 / 4-6);
    # grade-0/3 blades just use their own square.  All added terms besides the grade
    # sum are exact zeros, so this matches the f32 reference bit-for-bit (mod add order).
    q = ctr + pltpu.roll(ctr, 1, axis=1) + pltpu.roll(ctr, 127, axis=1) + y * m_edge

    norms = jnp.sqrt(jnp.abs(q))                               # cat(algebra.norms)
    scale = sa * (norms - 1.0) + 1.0
    o_ref[...] = (x / (scale + EPS)).astype(o_ref.dtype)


# ----------------------------------------------------------------------------
# Tiling helper + pallas_call wrapper
# ----------------------------------------------------------------------------
def _pick_row_tile(R, B, target=1024):
    """Packed-row tile TR: whole R (block == full dim) or a multiple of 8."""
    if R <= target:
        TR = R
        if B == 1 and R >= 16:
            # v7x megacore: guarantee >= 2 grid steps even with batch 1.
            TR = ((R + 1) // 2 + 7) // 8 * 8
    else:
        TR = target
    return max(int(TR), 1)


def normalization_layer(x, a_param):
    """x: (B, S, 8) multivectors, a_param: (max_seq, 4) -> (B, S, 8)."""
    B, S, F = x.shape
    assert F == MV_DIM
    assert a_param.shape[0] >= S

    R = pl.cdiv(S, PACK)                      # packed 128-lane rows per batch element
    TR = _pick_row_tile(R, B)
    R_pad = pl.cdiv(R, TR) * TR
    S_pad = R_pad * PACK

    # Lane-dense relayout: pure reshape (blade axis contiguous), pad S with zeros
    # (padded rows give norms=0 -> scale=1 -> out=0; sliced away at the end).
    x_p = jnp.pad(x, ((0, 0), (0, S_pad - S), (0, 0)))
    x_packed = x_p.reshape(B, R_pad, LANES)                    # (B, R_pad, 128)

    # sigmoid(a) on the tiny (S, 4) parameter, expanded to blades and packed the
    # same way; NOT broadcast over batch (the grid revisits this block instead).
    s_a = jax.nn.sigmoid(a_param[:S])                          # (S, 4)
    s_a_mv = jnp.repeat(s_a, np.asarray(SUBSPACE_SIZES), axis=-1,
                        total_repeat_length=MV_DIM)            # (S, 8)
    s_a_packed = jnp.pad(s_a_mv, ((0, S_pad - S), (0, 0))).reshape(R_pad, LANES)

    grid = (R_pad // TR, B)   # batch innermost -> s_a block constant across it
    out = pl.pallas_call(
        norm_kernel,
        out_shape=jax.ShapeDtypeStruct((B, R_pad, LANES), jnp.float32),
        grid=grid,
        in_specs=[
            pl.BlockSpec((None, TR, LANES), lambda r, b: (b, r, 0)),   # x rows
            pl.BlockSpec((TR, LANES), lambda r, b: (r, 0)),            # s_a per seq tile
        ],
        out_specs=pl.BlockSpec((None, TR, LANES), lambda r, b: (b, r, 0)),
        compiler_params=pltpu.CompilerParams(
            dimension_semantics=("parallel", "parallel")),
    )(x_packed, s_a_packed)

    return out.reshape(B, S_pad, MV_DIM)[:, :S, :]


# ----------------------------------------------------------------------------
# Pure-JAX reference (mirrors the PyTorch forward) for self-validation
# ----------------------------------------------------------------------------
def normalization_reference(x, a_param):
    B, S, F = x.shape
    offs = np.cumsum((0,) + SUBSPACE_SIZES)
    sq = x * x
    norms = jnp.concatenate(
        [jnp.sqrt(jnp.abs(jnp.sum(sq[..., offs[g]:offs[g + 1]], axis=-1, keepdims=True)))
         for g in range(N_GRADES)], axis=-1)                   # (B, S, 4)
    s_a = jax.nn.sigmoid(a_param[:S])                          # (S, 4)
    norms = s_a[None] * (norms - 1.0) + 1.0
    denom = jnp.repeat(norms, jnp.asarray(SUBSPACE_SIZES), axis=-1,
                       total_repeat_length=F) + EPS
    return x / denom


if __name__ == "__main__":
    # Small demo shapes: batch=2, seq=40 (exercises the pad-to-tile path too).
    B, S = 2, 40

    key = jax.random.PRNGKey(0)
    kx, ka = jax.random.split(key)
    x = jax.random.normal(kx, (B, S, MV_DIM), jnp.float32)
    # Learnable parameter `a` is (max_seq, n_subspaces); the module initializes it
    # to a constant, but we use small random values so the per-sequence / per-grade
    # scaling path is actually exercised.
    a = jax.random.normal(ka, (MAX_SEQ, N_GRADES), jnp.float32) * 0.5

    out = normalization_layer(x, a)
    out = jax.block_until_ready(out)

    ref = normalization_reference(x, a)
    assert out.shape == (B, S, MV_DIM) and out.dtype == jnp.float32
    assert bool(jnp.all(jnp.isfinite(out)))
    assert bool(jnp.allclose(out, ref, rtol=1e-5, atol=1e-6))
    print("KERNEL_OK")
</pallas_src>

<mosaic_0001>
module attributes {stable_mosaic.version = 11 : i64} {
  func.func @norm_kernel(%arg0: i32, %arg1: i32, %arg2: memref<1x3x128xf32, #tpu.memory_space<vmem>>, %arg3: memref<3x128xf32, #tpu.memory_space<vmem>>, %arg4: memref<1x3x128xf32, #tpu.memory_space<vmem>>) attributes {dimension_semantics = [#tpu.dimension_semantics<parallel>, #tpu.dimension_semantics<parallel>], iteration_bounds = array<i64: 1, 2>, scalar_prefetch = 0 : i64, scratch_operands = 0 : i64, tpu.core_type = #tpu.core_type<tc>, window_params = [{transform_indices = @transform_0, window_bounds = array<i64: 1, 3, 128>}, {transform_indices = @transform_1, window_bounds = array<i64: 3, 128>}, {transform_indices = @transform_2, window_bounds = array<i64: 1, 3, 128>}]} {
    %c0 = arith.constant 0 : index
    %c0_0 = arith.constant 0 : index
    %c0_1 = arith.constant 0 : index
    %0 = vector.load %arg2[%c0, %c0_0, %c0_1] : memref<1x3x128xf32, #tpu.memory_space<vmem>>, vector<1x3x128xf32>
    %1 = vector.shape_cast %0 : vector<1x3x128xf32> to vector<3x128xf32>
    %c0_2 = arith.constant 0 : index
    %c0_3 = arith.constant 0 : index
    %2 = vector.load %arg3[%c0_2, %c0_3] : memref<3x128xf32, #tpu.memory_space<vmem>>, vector<3x128xf32>
    %3 = tpu.iota {dimensions = array<i32: 1>} : vector<1x128xi32>
    %c8_i32 = arith.constant 8 : i32
    %c0_i32 = arith.constant 0 : i32
    %4 = arith.cmpi eq, %c8_i32, %c0_i32 : i32
    %c1_i32 = arith.constant 1 : i32
    %5 = arith.select %4, %c1_i32, %c8_i32 : i32
    %6 = vector.broadcast %5 : i32 to vector<1x128xi32>
    %7 = arith.remsi %3, %6 : vector<1x128xi32>
    %c0_i32_4 = arith.constant 0 : i32
    %8 = vector.broadcast %c0_i32_4 : i32 to vector<1x128xi32>
    %9 = arith.cmpi ne, %7, %8 : vector<1x128xi32>
    %c0_i32_5 = arith.constant 0 : i32
    %10 = vector.broadcast %c0_i32_5 : i32 to vector<1x128xi32>
    %11 = arith.cmpi slt, %7, %10 : vector<1x128xi32>
    %c0_i32_6 = arith.constant 0 : i32
    %12 = arith.cmpi slt, %5, %c0_i32_6 : i32
    %13 = vector.broadcast %12 : i1 to vector<1x128xi1>
    %14 = vector.broadcast %13 : vector<1x128xi1> to vector<1x128xi1>
    %15 = arith.xori %11, %14 : vector<1x128xi1>
    %16 = arith.andi %15, %9 : vector<1x128xi1>
    %17 = vector.broadcast %5 : i32 to vector<1x128xi32>
    %18 = arith.addi %7, %17 : vector<1x128xi32>
    %19 = arith.select %16, %18, %7 : vector<1x128xi1>, vector<1x128xi32>
    %c2_i32 = arith.constant 2 : i32
    %20 = vector.broadcast %c2_i32 : i32 to vector<1x128xi32>
    %21 = arith.cmpi eq, %19, %20 : vector<1x128xi32>
    %c5_i32 = arith.constant 5 : i32
    %22 = vector.broadcast %c5_i32 : i32 to vector<1x128xi32>
    %23 = arith.cmpi eq, %19, %22 : vector<1x128xi32>
    %24 = arith.ori %21, %23 : vector<1x128xi1>
    %cst = arith.constant 1.000000e+00 : f32
    %cst_7 = arith.constant 0.000000e+00 : f32
    %25 = vector.broadcast %cst : f32 to vector<1x128xf32>
    %26 = vector.broadcast %cst_7 : f32 to vector<1x128xf32>
    %27 = arith.select %24, %25, %26 : vector<1x128xi1>, vector<1x128xf32>
    %c0_i32_8 = arith.constant 0 : i32
    %28 = vector.broadcast %c0_i32_8 : i32 to vector<1x128xi32>
    %29 = arith.cmpi eq, %19, %28 : vector<1x128xi32>
    %c7_i32 = arith.constant 7 : i32
    %30 = vector.broadcast %c7_i32 : i32 to vector<1x128xi32>
    %31 = arith.cmpi eq, %19, %30 : vector<1x128xi32>
    %32 = arith.ori %29, %31 : vector<1x128xi1>
    %cst_9 = arith.constant 1.000000e+00 : f32
    %cst_10 = arith.constant 0.000000e+00 : f32
    %33 = vector.broadcast %cst_9 : f32 to vector<1x128xf32>
    %34 = vector.broadcast %cst_10 : f32 to vector<1x128xf32>
    %35 = arith.select %32, %33, %34 : vector<1x128xi1>, vector<1x128xf32>
    %36 = arith.mulf %1, %1 : vector<3x128xf32>
    %c1_i32_11 = arith.constant 1 : i32
    %37 = tpu.dynamic_rotate %36 by %c1_i32_11 dim 1 : vector<3x128xf32>, i32 -> vector<3x128xf32>
    %38 = arith.addf %37, %36 : vector<3x128xf32>
    %c127_i32 = arith.constant 127 : i32
    %39 = tpu.dynamic_rotate %36 by %c127_i32 dim 1 : vector<3x128xf32>, i32 -> vector<3x128xf32>
    %40 = arith.addf %38, %39 : vector<3x128xf32>
    %41 = vector.broadcast %27 : vector<1x128xf32> to vector<3x128xf32>
    %42 = arith.mulf %40, %41 : vector<3x128xf32>
    %c1_i32_12 = arith.constant 1 : i32
    %43 = tpu.dynamic_rotate %42 by %c1_i32_12 dim 1 : vector<3x128xf32>, i32 -> vector<3x128xf32>
    %44 = arith.addf %42, %43 : vector<3x128xf32>
    %c127_i32_13 = arith.constant 127 : i32
    %45 = tpu.dynamic_rotate %42 by %c127_i32_13 dim 1 : vector<3x128xf32>, i32 -> vector<3x128xf32>
    %46 = arith.addf %44, %45 : vector<3x128xf32>
    %47 = vector.broadcast %35 : vector<1x128xf32> to vector<3x128xf32>
    %48 = arith.mulf %36, %47 : vector<3x128xf32>
    %49 = arith.addf %46, %48 : vector<3x128xf32>
    %50 = math.absf %49 : vector<3x128xf32>
    %51 = math.sqrt %50 : vector<3x128xf32>
    %cst_14 = arith.constant 1.000000e+00 : f32
    %52 = vector.broadcast %cst_14 : f32 to vector<3x128xf32>
    %53 = arith.subf %51, %52 : vector<3x128xf32>
    %54 = arith.mulf %2, %53 : vector<3x128xf32>
    %cst_15 = arith.constant 1.000000e+00 : f32
    %55 = vector.broadcast %cst_15 : f32 to vector<3x128xf32>
    %56 = arith.addf %54, %55 : vector<3x128xf32>
    %cst_16 = arith.constant 9.99999997E-7 : f32
    %57 = vector.broadcast %cst_16 : f32 to vector<3x128xf32>
    %58 = arith.addf %56, %57 : vector<3x128xf32>
    %59 = arith.divf %1, %58 : vector<3x128xf32>
    %c0_17 = arith.constant 0 : index
    %c0_18 = arith.constant 0 : index
    %c0_19 = arith.constant 0 : index
    %60 = vector.load %arg4[%c0_17, %c0_18, %c0_19] : memref<1x3x128xf32, #tpu.memory_space<vmem>>, vector<1x3x128xf32>
    %61 = vector.shape_cast %60 : vector<1x3x128xf32> to vector<3x128xf32>
    %62 = vector.shape_cast %59 : vector<3x128xf32> to vector<1x3x128xf32>
    tpu.vector_store %arg4[%c0_17, %c0_18, %c0_19], %62 {strides = array<i32>} : memref<1x3x128xf32, #tpu.memory_space<vmem>>, vector<1x3x128xf32>,
    return
  }
  func.func @transform_0(%arg0: i32, %arg1: i32) -> (i32, i32, i32) {
    %c0_i32 = arith.constant 0 : i32
    %c0_i32_0 = arith.constant 0 : i32
    return %arg1, %arg0, %c0_i32 : i32, i32, i32
  }
  func.func @transform_1(%arg0: i32, %arg1: i32) -> (i32, i32) {
    %c0_i32 = arith.constant 0 : i32
    %c0_i32_0 = arith.constant 0 : i32
    return %arg0, %c0_i32 : i32, i32
  }
  func.func @transform_2(%arg0: i32, %arg1: i32) -> (i32, i32, i32) {
    %c0_i32 = arith.constant 0 : i32
    %c0_i32_0 = arith.constant 0 : i32
    return %arg1, %arg0, %c0_i32 : i32, i32, i32
  }
}

</mosaic_0001>

<bundles_post_ra>
// kernel: tpu_custom_call.1
= control target key start
LH: loop header
LB: loop body
LE: loop exit
PB: predicated region body
PF: predicated region fallthrough
CT: control target
= control target key end

     0   :  { %s434_s9 = smov 0   ;;  %s436_s10 = smov 0   ;;  %s482_s0 = inlined_call_operand.vmem [shape: f32[2,3,128], index: 0, kind: input, shape index: {}]   ;;  %s483_s1 = inlined_call_operand.vmem [shape: f32[3,128], index: 1, kind: input, shape index: {}]   ;;  %s484_s2 = inlined_call_operand.vmem [shape: f32[2,3,128], index: 2, kind: output, shape index: {}]  }
   0x1   :  { %s438_s11 = smov 0  }
   0x2 LB: > { %s21_s12 = sadd.s32 1, %s410_s10  ;;  %p355_p0 = scmp.ge.s32.totalorder %s414_s11, 1  ;;  %s414_s11 = sphi %s438_s11, %s12_s11   ;;  %s410_s10 = sphi %s436_s10, %s486_s10   ;;  %s406_s9 = sphi %s434_s9, %s485_s9  }
   0x3   : > { %p22_p1 = scmp.ge.s32.totalorder %s21_s12, 2  ;;  %p139_p2 = scmp.lt.s32.totalorder %s414_s11, 3 }
   0x5   : > { %s488_s12 = smov (%p22_p1, %s21_s12), 0  ;;  %p140_p3 = pnand %p355_p0, %p139_p2 }
   0x6   : > { %p169_p4 = scmp.lt.s32.totalorder (!%p140_p3), %s406_s9, 1  ;;  %s416_s17 = smov (!%p140_p3), 1  }
   0x7   : > { %143 = sbr.rel (%p140_p3) target bundleno = 323 (0x143), region = 28  ;;  %s417_s18 = smov (!%p140_p3), 127  }
   0xc   : > { %s490_s9 = smov (!%p169_p4, %s406_s9), 1  ;;  %v189_v2 = vlaneseq  ;;  %v418_v7 = vmov 0.0   ;;  %v188_v29 = vld [vmem:[%s483_s1] sm:$0x7] }
   0xd   : > { %s356_s13 = sshll.u32 %s490_s9, 2 }
   0xe   : > { %s175_s16 = scalar_lea.vmem %s482_s0, %s356_s13  ;;  %v190_v3 = vand.u32 127, %v189_v2  ;;  %s186_s23 = scalar_lea.vmem %s484_s2, %s356_s13 }
   0xf   : > { %v460_v0 = vld [vmem:[%s175_s16] sm:$0x7] }
  0x10   : > { %v211_v1 = vmul.f32 %v460_v0, %v460_v0  ;;  %v195_v4 = vand.u32 7, %v190_v3 }
  0x12   : > { %212 = vrot.lane.b32.xlu0 %v211_v1, %s416_s17  ;;  %vm203_vm0 = vcmp.eq.s32.totalorder %v195_v4, 2  ;;  %vm204_vm1 = vcmp.eq.s32.totalorder %v195_v4, 5  ;;  %vm207_vm3 = vcmp.eq.s32.totalorder %v195_v4, 0  ;;  %vm208_vm4 = vcmp.eq.s32.totalorder %v195_v4, 7 }
  0x13   : > { %vm205_vm2 = vmor %vm203_vm0, %vm204_vm1 }
  0x14   : > { %v206_v8 = vsel %vm205_vm2, 1.0, %v418_v7  ;;  %vm209_vm5 = vmor %vm207_vm3, %vm208_vm4 }
  0x15   : > { %v210_v13 = vsel %vm209_vm5, 1.0, %v418_v7 }
  0x16   : > { %v225_v15 = vmul.f32 %v211_v1, %v210_v13 }
  0x1a   : > { %215 = vrot.lane.b32.xlu0 %v211_v1, %s417_s18 }
  0x84   : > { %v213_v5 = vpop.permute.xlu0 %212 }
  0x85   : > { %v214_v6 = vadd.f32 %v213_v5, %v211_v1 }
  0x8c   : > { %v216_v9 = vpop.permute.xlu0 %215 }
  0x8d   : > { %v217_v10 = vadd.f32 %v216_v9, %v214_v6 }
  0x8f   : > { %v218_v11 = vmul.f32 %v217_v10, %v206_v8 }
  0x91   : > { %219 = vrot.lane.b32.xlu1 %v218_v11, %s416_s17 }
  0x99   : > { %222 = vrot.lane.b32.xlu1 %v218_v11, %s417_s18 }
 0x103   : > { %v220_v12 = vpop.permute.xlu1 %219 }
 0x104   : > { %v221_v14 = vadd.f32 %v220_v12, %v218_v11 }
 0x10b   : > { %v223_v16 = vpop.permute.xlu1 %222 }
 0x10c   : > { %v224_v17 = vadd.f32 %v223_v16, %v221_v14 }
 0x10e   : > { %v226_v18 = vadd.f32 %v225_v15, %v224_v17 }
 0x110   : > { %v227_v19 = vand.u32 2147483647, %v226_v18 }
 0x112   : > { %388 = vrsqrt.f32 %v227_v19  ;;  %vm235_vm6 = vcmp.eq.f32.partialorder %v227_v19, inf  ;;  %v238_v27 = vand.u32 2147483648, %v227_v19  ;;  %vm237_vm7 = vcmp.eq.f32.partialorder %v227_v19, 0.0 }
 0x118   : > { %v389_v20 = vpop.eup %388 }
 0x119   : > { %v229_v21 = vmul.f32 %v389_v20, %v227_v19 }
 0x11b   : > { %v230_v22 = vmul.f32 %v389_v20, %v229_v21 }
 0x11d   : > { %v231_v23 = vmul.f32 0.5, %v230_v22 }
 0x11f   : > { %v232_v24 = vsub.f32 1.5, %v231_v23 }
 0x121   : > { %v233_v25 = vmul.f32 %v389_v20, %v232_v24 }
 0x123   : > { %v234_v26 = vmul.f32 %v233_v25, %v227_v19 }
 0x125   : > { %v236_v28 = vsel %vm235_vm6, %v227_v19, %v234_v26 }
 0x126   : > { %v239_v30 = vsel %vm237_vm7, %v238_v27, %v236_v28 }
 0x127   : > { %v358_v31 = vadd.f32 -1.0, %v239_v30 }
 0x129   : > { %v241_v32 = vmul.f32 %v358_v31, %v188_v29 }
 0x12b   : > { %v242_v33 = vadd.f32 1.0, %v241_v32 }
 0x12d   : > { %v243_v34 = vadd.f32 1e-06, %v242_v33 }
 0x12f   : > { %390 = vrcp.f32 %v243_v34  ;;  %v255_v38 = vand.u32 2147483648, %v243_v34  ;;  %v253_v40 = vand.u32 2147483647, %v243_v34  ;;  %vm249_vm9 = vweird.f32 %v243_v34 }
 0x131   : > { %v256_v42 = vor.u32 1.1754944e-38, %v255_v38  ;;  %vm254_vm11 = vcmp.eq.f32.partialorder %v253_v40, 8.507059e+37 }
 0x135   : > { %v391_v35 = vpop.eup %390 }
 0x136   : > { %v245_v36 = vmul.f32 %v391_v35, %v243_v34  ;;  %vm250_vm8 = vweird.f32 %v391_v35 }
 0x137   : > { %vm251_vm10 = vmor %vm249_vm9, %vm250_vm8 }
 0x138   : > { %v246_v37 = vsub.f32 1.0, %v245_v36 }
 0x13a   : > { %v247_v39 = vmul.f32 %v391_v35, %v246_v37 }
 0x13c   : > { %v248_v41 = vadd.f32 %v391_v35, %v247_v39 }
 0x13e   : > { %v252_v43 = vsel %vm251_vm10, %v391_v35, %v248_v41 }
 0x13f   : > { %v257_v44 = vsel %vm254_vm11, %v256_v42, %v252_v43 }
 0x140   : > { %v258_v45 = vmul.f32 %v257_v44, %v460_v0 }
 0x142   : > { %259 = vst [vmem:[%s186_s23] sm:$0x7] %v258_v45 }
 0x143 PF: > { %s12_s11 = sadd.s32 1, %s414_s11   ;;  %s485_s9 = smov %s410_s10 }
 0x144   : > { %p9_p5 = scmp.ge.s32.totalorder %s12_s11, 4   ;;  %s486_s10 = smov %s488_s12 }
 0x146   :  { %11 = sbr.rel (!%p9_p5) target bundleno = 2 (0x2), region = 61 }

</bundles_post_ra>
